<compile_context>
chip_gen: v7x
topology: tpu7x:2x2x1
jax: 0.10.0
libtpu: 0.0.40
codegen_flags: <defaults>
</compile_context>

<pallas_src>
import functools

import numpy as np
import jax
import jax.numpy as jnp
from jax import lax
from jax.experimental import pallas as pl
from jax.experimental.pallas import tpu as pltpu

NEG = -1.0e30          # finite "-inf" so autodiff through logaddexp never NaNs
DEFAULT_TILE_M = 512   # v5e/v6e sweet spot; shrunk automatically when the
                       # double-buffered blocks would overflow the per-chip
                       # VMEM budget (re-derived for v7x's 64 MiB).

_VMEM_BUDGET = None


def _round_up(x, m):
    return ((x + m - 1) // m) * m


def _vmem_budget():
    """Conservative per-kernel VMEM budget, re-derived per chip generation."""
    global _VMEM_BUDGET
    if _VMEM_BUDGET is None:
        cap = 64 * 1024 * 1024              # safe fallback (v7x physical VMEM)
        try:
            cap = int(getattr(pltpu.get_tpu_info(), "vmem_capacity_bytes", cap)) or cap
        except Exception:
            pass
        _VMEM_BUDGET = min(max(int(cap * 0.55), 24 * 1024 * 1024), 96 * 1024 * 1024)
    return _VMEM_BUDGET


def _maybe_vmem_limit(est_bytes):
    # Only raise the scoped-VMEM limit when the estimated footprint needs it.
    if est_bytes <= 24 * 1024 * 1024:
        return None
    return _vmem_budget()


def _pick_div_tile(total, candidates, row_bytes, fixed_bytes):
    """Largest candidate tile that divides `total` and fits the VMEM budget."""
    budget = _vmem_budget()
    divisors = [c for c in candidates if c <= total and total % c == 0]
    for c in divisors:                       # candidates given largest-first
        if fixed_bytes + c * row_bytes <= budget:
            return c
    if divisors:
        return divisors[-1]
    return total


# ----------------------------------------------------------------------------
# Kernel 1: fused multi-head projection (single wide MXU matmul per tile)
# ----------------------------------------------------------------------------
def _apply_act(y, act):
    if act == "tanh":
        return jnp.tanh(y)
    if act == "relu":
        return jnp.maximum(y, 0.0)
    if act == "log_softmax":
        m = jnp.max(y, axis=-1, keepdims=True)
        return y - (m + jnp.log(jnp.sum(jnp.exp(y - m), axis=-1, keepdims=True)))
    return y


def _make_fused_proj_kernel(splits, acts, rowmax_flags):
    n_heads = len(splits)

    def kernel(x_ref, w_ref, b_ref, *o_refs):
        x = x_ref[...].astype(jnp.bfloat16)              # bf16 MXU operand
        # one MXU push sequence for all heads (no ragged per-head N tiles),
        # then 128-aligned in-register slices with per-head epilogues.
        y = jnp.dot(x, w_ref[...], preferred_element_type=jnp.float32) + b_ref[...]
        head_refs = o_refs[:n_heads]
        max_refs = o_refs[n_heads:]
        mi = 0
        for (off, sz), act, want_max, o_ref in zip(splits, acts, rowmax_flags,
                                                   head_refs):
            yi = y[:, off:off + sz]
            if want_max:
                # per-row max emitted while the f32 activation is in VMEM, so
                # the normalizer never re-reads `am` from HBM for its row-max.
                max_refs[mi][...] = jnp.max(yi, axis=-1, keepdims=True)
                mi += 1
            o_ref[...] = _apply_act(yi, act).astype(o_ref.dtype)

    return kernel


def pallas_multi_proj(x, heads, *, max_tile=DEFAULT_TILE_M):
    """Fused y_i = act_i(x @ w_i + b_i): x read from HBM once for all heads.

    heads: list of dicts {w:(K,Ni) bf16, b:(1,Ni) f32, act, dtype, rowmax}.
    Returns a list of (output, rowmax-or-None) in head order.
    """
    lead = x.shape[:-1]
    k = x.shape[-1]
    m = int(np.prod(lead)) if lead else 1
    sizes = [int(h["w"].shape[1]) for h in heads]
    n_total = sum(sizes)

    in_bytes = np.dtype(x.dtype).itemsize
    row_bytes = 2 * k * in_bytes + 4 * n_total
    row_bytes += sum(2 * n * np.dtype(h["dtype"]).itemsize
                     for n, h in zip(sizes, heads))
    fixed = 2 * (k + 1) * n_total * 2 + (1 << 16)

    tile = max_tile
    while tile > 64 and fixed + tile * row_bytes > _vmem_budget():
        tile //= 2
    if m <= tile:
        m_pad = _round_up(m, 16)
        tile = m_pad
    else:
        m_pad = _round_up(m, tile)

    x2 = x.reshape(m, k)
    if m_pad != m:
        x2 = jnp.pad(x2, ((0, m_pad - m), (0, 0)))

    wcat = jnp.concatenate([h["w"] for h in heads], axis=1)     # (K, sumN) bf16
    bcat = jnp.concatenate([h["b"] for h in heads], axis=1)     # (1, sumN) f32
    offs = np.cumsum([0] + sizes)
    splits = [(int(offs[i]), sizes[i]) for i in range(len(heads))]
    acts = [h["act"] for h in heads]
    flags = [bool(h["rowmax"]) for h in heads]

    out_shapes = [jax.ShapeDtypeStruct((m_pad, n), h["dtype"])
                  for n, h in zip(sizes, heads)]
    out_specs = [pl.BlockSpec((tile, n), lambda i: (i, 0)) for n in sizes]
    for h in heads:
        if h["rowmax"]:
            out_shapes.append(jax.ShapeDtypeStruct((m_pad, 1), jnp.float32))
            out_specs.append(pl.BlockSpec((tile, 1), lambda i: (i, 0)))

    outs = pl.pallas_call(
        _make_fused_proj_kernel(splits, acts, flags),
        out_shape=out_shapes,
        grid=(m_pad // tile,),
        in_specs=[
            pl.BlockSpec((tile, k), lambda i: (i, 0)),
            pl.BlockSpec((k, n_total), lambda i: (0, 0)),
            pl.BlockSpec((1, n_total), lambda i: (0, 0)),
        ],
        out_specs=out_specs,
        compiler_params=pltpu.CompilerParams(
            dimension_semantics=("parallel",),
            vmem_limit_bytes=_maybe_vmem_limit(fixed + tile * row_bytes)),
    )(x2, wcat, bcat)

    res = []
    ri = len(heads)
    for idx, h in enumerate(heads):
        o = outs[idx][:m].reshape(*lead, sizes[idx])
        rm = None
        if h["rowmax"]:
            rm = outs[ri][:m].reshape(*lead, 1)
            ri += 1
        res.append((o, rm))
    return res


def pallas_linear(x, w, b, *, activation="none", out_dtype=jnp.float32):
    return pallas_multi_proj(
        x, [dict(w=w, b=b, act=activation, dtype=out_dtype, rowmax=False)])[0][0]


# ----------------------------------------------------------------------------
# Kernel 2: RNNT "trivial joiner" normalizers (MXU logsumexp), T-tiled
# ----------------------------------------------------------------------------
def _rnnt_norm_kernel(am_ref, lm_ref, mam_ref, o_ref, elm_ref, mlm_ref):
    # per-batch LM factor computed once (first T tile of this b) into scratch
    @pl.when(pl.program_id(1) == 0)
    def _():
        lm = lm_ref[0]                                       # (S1, Vp) f32
        m_lm = jnp.max(lm, axis=-1, keepdims=True)
        mlm_ref[...] = m_lm
        elm_ref[...] = jnp.exp(lm - m_lm).astype(jnp.bfloat16)

    am = am_ref[0]                                           # (tT, Vp) f32
    m_am = jnp.max(am, axis=-1, keepdims=True)               # (tT, 1)
    # TODO(synk): bf16 MXU operands give ~1e-3 abs error vs k2's f32 path;
    # validate before shipping or switch the dot to f32 inputs.
    e_am = jnp.exp(am - m_am).astype(jnp.bfloat16)
    # logsumexp_v(am[t]+lm[s]) = m_am[t] + m_lm[s] + log((e_lm @ e_am^T)[s,t]);
    # contraction on the shared last dim -> MXU matmul (transpose folded into
    # the operand push, no explicit XLU vxpose of the (tT,Vp) tile).
    z = lax.dot_general(elm_ref[...], e_am, (((1,), (1,)), ((), ())),
                        preferred_element_type=jnp.float32)  # (S1, tT)
    # m_am along the output lane axis arrives pre-oriented as (1, tT) (emitted
    # by the projection kernel) -> no in-kernel sublane->lane transpose.
    o_ref[0] = jnp.log(jnp.maximum(z, 1e-30)) + mlm_ref[...] + mam_ref[0]


def pallas_rnnt_normalizers(am, lm, mam_lane):
    """normalizers[b, s, t] = logsumexp_v(am[b, t, v] + lm[b, s, v]).

    MXU formulation; T axis tiled so the output stores are lane-dense and the
    per-step VMEM footprint is independent of T (fits v7x's 64 MiB VMEM).
    """
    B, T, Vp = am.shape
    S1 = lm.shape[1]
    am = am.astype(jnp.float32)
    lm = lm.astype(jnp.float32)
    mam_lane = mam_lane.astype(jnp.float32)                  # (B, 1, T)

    row_bytes = 2 * Vp * 4 + 2 * S1 * 4
    fixed = 2 * S1 * Vp * 4 + S1 * Vp * 2 + S1 * 4 + (1 << 16)
    tT = _pick_div_tile(T, (512, 256, 128), row_bytes, fixed)

    return pl.pallas_call(
        _rnnt_norm_kernel,
        out_shape=jax.ShapeDtypeStruct((B, S1, T), jnp.float32),
        grid=(B, T // tT),
        in_specs=[
            pl.BlockSpec((1, tT, Vp), lambda b, i: (b, i, 0)),
            pl.BlockSpec((1, S1, Vp), lambda b, i: (b, 0, 0)),
            pl.BlockSpec((1, 1, tT), lambda b, i: (b, 0, i)),
        ],
        out_specs=pl.BlockSpec((1, S1, tT), lambda b, i: (b, 0, i)),
        scratch_shapes=[pltpu.VMEM((S1, Vp), jnp.bfloat16),
                        pltpu.VMEM((S1, 1), jnp.float32)],
        compiler_params=pltpu.CompilerParams(
            dimension_semantics=("parallel", "arbitrary"),
            vmem_limit_bytes=_maybe_vmem_limit(fixed + tT * row_bytes)),
    )(am, lm, mam_lane)


# ----------------------------------------------------------------------------
# Kernel 3: fully-fused pruned joiner -> only px / py leave the kernel
# ----------------------------------------------------------------------------
def _pruned_joiner_kernel(am_ref, lm_ref, sb_ref, tok_ref, w_ref, b_ref,
                          px_ref, py_ref, *, blank_id):
    r = pl.program_id(2)
    am = am_ref[0].astype(jnp.float32)                       # (tT, Jp)
    lm_all = lm_ref[0]                                       # (S1p, Jp) bf16 resident per b
    sb = sb_ref[0]                                           # (tT, 1) int32
    tok = tok_ref[0]                                         # (tT, 1) int32

    # gather lm_j rows for prune offset r via a one-hot MXU matmul
    # (exact row select; never materializes (R,B,T,J) copies in HBM)
    s_iota = lax.broadcasted_iota(jnp.int32, (am.shape[0], lm_all.shape[0]), 1)
    one_hot = (s_iota == (sb + r)).astype(jnp.bfloat16)
    lm_rows = jnp.dot(one_hot, lm_all, preferred_element_type=jnp.float32)

    h = jnp.tanh(am + lm_rows).astype(jnp.bfloat16)
    logits = jnp.dot(h, w_ref[...], preferred_element_type=jnp.float32) + b_ref[...]
    m = jnp.max(logits, axis=-1, keepdims=True)
    lse = m + jnp.log(jnp.sum(jnp.exp(logits - m), axis=-1, keepdims=True))

    # only the two lattice entries leave the kernel -> ~V/2 less HBM traffic
    v_iota = lax.broadcasted_iota(jnp.int32, logits.shape, 1)
    px_ref[0] = (jnp.sum(jnp.where(v_iota == tok, logits, 0.0),
                         axis=-1, keepdims=True) - lse)
    py_ref[0] = (jnp.sum(jnp.where(v_iota == blank_id, logits, 0.0),
                         axis=-1, keepdims=True) - lse)


def pallas_pruned_joiner(am_j, lm_j, s_begin, sym_tok, w, b, blank_id):
    """px/py of the pruned joiner computed fully in-kernel.

    am_j (B,T,Jp) bf16, lm_j (B,S1,Jp) bf16 (kept resident per b),
    s_begin (B,T) int32, sym_tok (B,T,R) int32 -> px, py (B,T,R) f32 where
      px[b,t,r] = log_softmax(logits)[sym_tok[b,t,r]], py = log_softmax[blank].
    Neither the (B,T,R,V) log-probs nor the (R,B,T,J) pruned lm copies ever
    touch HBM.
    """
    B, T, Jp = am_j.shape
    R = sym_tok.shape[2]
    Vp = w.shape[1]
    S1 = lm_j.shape[1]
    S1p = _round_up(S1, 8)
    if S1p != S1:
        lm_j = jnp.pad(lm_j, ((0, 0), (0, S1p - S1), (0, 0)))

    row_bytes = 2 * Jp * 2 + 3 * Vp * 4 + 64
    fixed = 2 * (S1p * Jp * 2 + Jp * Vp * 2 + Vp * 4) + (1 << 16)
    tT = _pick_div_tile(T, (512, 256, 128), row_bytes, fixed)

    sb3 = s_begin.astype(jnp.int32)[:, :, None]                           # (B,T,1)
    tok3 = jnp.transpose(sym_tok.astype(jnp.int32),
                         (2, 0, 1)).reshape(R * B, T)[..., None]          # (R*B,T,1)

    px, py = pl.pallas_call(
        functools.partial(_pruned_joiner_kernel, blank_id=blank_id),
        out_shape=[jax.ShapeDtypeStruct((R * B, T, 1), jnp.float32),
                   jax.ShapeDtypeStruct((R * B, T, 1), jnp.float32)],
        grid=(B, T // tT, R),
        in_specs=[
            pl.BlockSpec((1, tT, Jp), lambda bb, i, r: (bb, i, 0)),
            pl.BlockSpec((1, S1p, Jp), lambda bb, i, r: (bb, 0, 0)),
            pl.BlockSpec((1, tT, 1), lambda bb, i, r: (bb, i, 0)),
            pl.BlockSpec((1, tT, 1), lambda bb, i, r: (r * B + bb, i, 0)),
            pl.BlockSpec((Jp, Vp), lambda bb, i, r: (0, 0)),
            pl.BlockSpec((1, Vp), lambda bb, i, r: (0, 0)),
        ],
        out_specs=[pl.BlockSpec((1, tT, 1), lambda bb, i, r: (r * B + bb, i, 0)),
                   pl.BlockSpec((1, tT, 1), lambda bb, i, r: (r * B + bb, i, 0))],
        compiler_params=pltpu.CompilerParams(
            dimension_semantics=("parallel", "parallel", "arbitrary"),
            vmem_limit_bytes=_maybe_vmem_limit(fixed + tT * row_bytes)),
    )(am_j, lm_j, sb3, tok3, w, b)

    px = jnp.transpose(px[..., 0].reshape(R, B, T), (1, 2, 0))            # (B,T,R)
    py = jnp.transpose(py[..., 0].reshape(R, B, T), (1, 2, 0))
    return px, py


# ----------------------------------------------------------------------------
# JAX glue: RNNT lattice DP (associative-scan columns), pruning, CTC DP
# ----------------------------------------------------------------------------
def _fix_px_for_boundary(px, x_lens):
    T1 = px.shape[2]
    col = jnp.arange(T1)[None, None, :]
    return jnp.where(col >= x_lens[:, None, None], NEG, px)


def _rnnt_dp_loglik(px, py, y_lens, x_lens):
    """k2-style mutual-information recursion over the RNNT lattice.
    The per-column symbol recursion (a log-space linear recurrence) runs as an
    associative scan: log2(S+1) vector steps instead of S sequential steps."""
    B, S, T1 = px.shape
    p0 = jnp.concatenate(
        [jnp.zeros((B, 1), jnp.float32), jnp.cumsum(px[:, :, 0], axis=1)], axis=1)
    px_cols = jnp.moveaxis(px[:, :, 1:], 2, 0)    # (T, B, S)
    py_cols = jnp.moveaxis(py, 2, 0)              # (T, B, S+1)
    zeros_col = jnp.zeros((B, 1), jnp.float32)

    def combine(e1, e2):
        a1, b1 = e1
        a2, b2 = e2
        return jnp.logaddexp(a2, a1 + b2), b1 + b2

    def col_step(p_prev, cols):
        px_c, py_c = cols
        a = p_prev + py_c                                     # blank into col t+1
        bshift = jnp.concatenate([zeros_col, px_c], axis=1)   # symbol within col
        p_new, _ = lax.associative_scan(combine, (a, bshift), axis=1)
        return p_new, p_new

    _, cols = lax.scan(col_step, p0, (px_cols, py_cols))
    all_p = jnp.concatenate([p0[None], cols], axis=0)         # (T+1, B, S+1)
    return all_p[x_lens, jnp.arange(B), y_lens]


def rnnt_simple_loss_and_grads(am, lm, normalizers, symbols, y_lens, x_lens, blank):
    B, T, _ = am.shape
    S = symbols.shape[1]
    b_idx = jnp.arange(B)[:, None, None]
    t_idx = jnp.arange(T)[None, None, :]
    am_sym = am[b_idx, t_idx, symbols[:, :, None]]            # (B, S, T)
    lm_sym = jnp.take_along_axis(lm[:, :S, :], symbols[:, :, None], axis=2)[..., 0]
    px = am_sym + lm_sym[:, :, None] - normalizers[:, :S, :]
    px = jnp.concatenate([px, jnp.full((B, S, 1), NEG)], axis=2)
    px = _fix_px_for_boundary(px, x_lens)
    py = am[:, :, blank][:, None, :] + lm[:, :, blank][:, :, None] - normalizers

    def total_ll(px_, py_):
        return jnp.sum(_rnnt_dp_loglik(px_, py_, y_lens, x_lens))

    ll, (px_grad, py_grad) = jax.value_and_grad(total_ll, argnums=(0, 1))(px, py)
    return -ll, px_grad, py_grad   # reduction="sum"


def get_rnnt_prune_ranges(px_grad, py_grad, y_lens, x_lens, s_range):
    """k2.get_rnnt_prune_ranges: pick an s_range-wide symbol window per frame."""
    B, S, T1 = px_grad.shape
    T = T1 - 1
    S1 = S + 1
    px_part = jnp.concatenate([px_grad, jnp.zeros((B, 1, T1))], axis=1)
    py_part = jnp.concatenate([py_grad, jnp.zeros((B, S1, 1))], axis=2)
    tot = jnp.concatenate([jnp.zeros((B, 1, T1)), px_part + py_part], axis=1)
    cum = jnp.cumsum(tot, axis=1)
    diff = cum[:, s_range:, :] - cum[:, :-s_range, :]
    s_begin = jnp.argmax(diff, axis=1)[:, :T].astype(jnp.int32)
    upper = jnp.maximum(y_lens + 1 - s_range, 0).astype(jnp.int32)
    s_begin = jnp.minimum(s_begin, upper[:, None])

    # TODO(synk): simplified monotonic adjustment vs k2's _adjust_pruning_lower_bound.
    def mono(prev, cur_raw):
        cur = jnp.clip(cur_raw, prev, prev + s_range - 1)
        return cur, cur

    first = jnp.zeros((B,), jnp.int32)
    _, rest = lax.scan(mono, first, s_begin.T[1:])
    s_begin = jnp.concatenate([first[None], rest], axis=0).T  # (B, T)
    ranges = s_begin[:, :, None] + jnp.arange(s_range, dtype=jnp.int32)[None, None, :]
    return ranges


def rnnt_pruned_loss(px_vals, py_vals, ranges, num_symbols, y_lens, x_lens):
    """Pruned RNNT loss from the in-kernel gathered px/py values (B, T, R)."""
    B, T, _ = px_vals.shape
    S = num_symbols
    S1 = S + 1
    b_idx = jnp.arange(B)[:, None, None]
    t_idx = jnp.arange(T)[None, :, None]
    py_full = jnp.full((B, S1, T), NEG).at[b_idx, ranges, t_idx].set(py_vals)
    px_core = jnp.full((B, S, T), NEG).at[b_idx, ranges, t_idx].set(
        px_vals, mode="drop")
    px_full = jnp.concatenate([px_core, jnp.full((B, S, 1), NEG)], axis=2)
    px_full = _fix_px_for_boundary(px_full, x_lens)
    ll = _rnnt_dp_loglik(px_full, py_full, y_lens, x_lens)
    return -jnp.sum(ll)   # reduction="sum"


def ctc_loss_per_utt(log_probs, x_lens, targets, target_lens, blank):
    """torch.nn.functional.ctc_loss(..., reduction='none') forward algorithm."""
    B, T, _ = log_probs.shape
    U = targets.shape[1]
    L = 2 * U + 1
    ext = jnp.full((B, L), blank, dtype=jnp.int32).at[:, 1::2].set(targets)
    ext_m2 = jnp.concatenate([jnp.full((B, 2), -1, jnp.int32), ext[:, :-2]], axis=1)
    allow_skip = (ext != blank) & (ext != ext_m2)

    # hoist the per-timestep vocab gather out of the sequential scan
    lp_ext = jnp.take_along_axis(log_probs, ext[:, None, :], axis=2)   # (B, T, L)

    alpha0 = jnp.full((B, L), NEG, jnp.float32)
    alpha0 = alpha0.at[:, 0].set(lp_ext[:, 0, 0]).at[:, 1].set(lp_ext[:, 0, 1])

    def step(alpha, inp):
        t, lp_t = inp
        sh1 = jnp.concatenate([jnp.full((B, 1), NEG), alpha[:, :-1]], axis=1)
        sh2 = jnp.concatenate([jnp.full((B, 2), NEG), alpha[:, :-2]], axis=1)
        acc = jnp.logaddexp(alpha, sh1)
        acc = jnp.logaddexp(acc, jnp.where(allow_skip, sh2, NEG))
        new_alpha = acc + lp_t
        new_alpha = jnp.where((t < x_lens)[:, None], new_alpha, alpha)
        return new_alpha, None

    alpha_T, _ = lax.scan(step, alpha0,
                          (jnp.arange(1, T), jnp.moveaxis(lp_ext[:, 1:], 1, 0)))
    last = 2 * target_lens
    a_last = jnp.take_along_axis(alpha_T, last[:, None], axis=1)[:, 0]
    a_prev = jnp.take_along_axis(alpha_T, jnp.maximum(last - 1, 0)[:, None], axis=1)[:, 0]
    return -jnp.logaddexp(a_last, a_prev)


# ----------------------------------------------------------------------------
# Parameters & forward
# ----------------------------------------------------------------------------
def make_params(key, input_dim, encoder_dim, decoder_dim, joiner_dim, vocab_size):
    ks = jax.random.split(key, 12)
    vocab_pad = _round_up(vocab_size, 128)
    joiner_pad = _round_up(joiner_dim, 128)

    def lin(k, fan_in, fan_out, in_pad=None, out_pad=None, pad_bias=0.0):
        kw, kb = jax.random.split(k)
        w = jax.random.normal(kw, (fan_in, fan_out), jnp.float32) / np.sqrt(fan_in)
        b = jax.random.normal(kb, (fan_out,), jnp.float32) * 0.01
        ip = in_pad or fan_in
        op = out_pad or fan_out
        # Output dims padded to 128 multiples (lane-dense stores / dense MXU
        # N-tiles).  Padded lanes: zero weights; bias NEG for heads whose
        # output is fed into a logsumexp / log-softmax so they contribute 0.
        w = jnp.pad(w, ((0, ip - fan_in), (0, op - fan_out)))
        b = jnp.concatenate([b, jnp.full((op - fan_out,), pad_bias, jnp.float32)])
        return w.astype(jnp.bfloat16), b.reshape(1, op)

    p = {}
    p["enc_w"], p["enc_b"] = lin(ks[0], input_dim, encoder_dim)
    p["dec_emb"] = jax.random.normal(ks[1], (vocab_size, decoder_dim)) / np.sqrt(decoder_dim)
    p["lang_emb"] = jax.random.normal(ks[2], (vocab_size, decoder_dim)) / np.sqrt(decoder_dim)
    p["dec_w"], p["dec_b"] = lin(ks[3], decoder_dim, decoder_dim)
    p["simple_am_w"], p["simple_am_b"] = lin(ks[4], encoder_dim, vocab_size,
                                             out_pad=vocab_pad, pad_bias=NEG)
    p["simple_lm_w"], p["simple_lm_b"] = lin(ks[5], decoder_dim, vocab_size,
                                             out_pad=vocab_pad, pad_bias=NEG)
    p["join_enc_w"], p["join_enc_b"] = lin(ks[6], encoder_dim, joiner_dim,
                                           out_pad=joiner_pad)
    p["join_dec_w"], p["join_dec_b"] = lin(ks[7], decoder_dim, joiner_dim,
                                           out_pad=joiner_pad)
    p["join_out_w"], p["join_out_b"] = lin(ks[8], joiner_dim, vocab_size,
                                           in_pad=joiner_pad, out_pad=vocab_pad,
                                           pad_bias=NEG)
    p["ctc_w"], p["ctc_b"] = lin(ks[9], encoder_dim, vocab_size,
                                 out_pad=vocab_pad, pad_bias=NEG)
    return p


def transducer_forward(p, x, x_lens, y_rows, lang_rows, blank_id=0, prune_range=3):
    B, T0, _ = x.shape
    # Pad the time axis to a 128 multiple so every (.., T)-lane output store
    # downstream (normalizers, joiner px/py) is lane-dense; x_lens stay true.
    T = _round_up(T0, 128)
    if T != T0:
        x = jnp.pad(x, ((0, 0), (0, T - T0), (0, 0)))

    # ---- ragged-tensor bookkeeping (host-side glue, mirrors k2 padding) ----
    y_lens_np = np.array([len(r) for r in y_rows], np.int32)
    U = int(y_lens_np.max())
    y_padded_np = np.zeros((B, U), np.int32)
    sos_y_np = np.full((B, U + 1), blank_id, np.int32)
    lang_np = np.full((B, U + 1), blank_id, np.int32)
    for bb, (r, lr) in enumerate(zip(y_rows, lang_rows)):
        y_padded_np[bb, : len(r)] = r
        sos_y_np[bb, 1: len(r) + 1] = r          # add_sos: blank prepended
        lang_np[bb, : len(lr)] = lr
    y_padded = jnp.asarray(y_padded_np)
    sos_y_padded = jnp.asarray(sos_y_np)
    lang_padded = jnp.asarray(lang_np)
    y_lens = jnp.asarray(y_lens_np)
    x_lens = jnp.asarray(x_lens, jnp.int32)

    # ---- encoder (fused tanh epilogue; bf16 activations halve HBM traffic) ----
    # TODO(synk): real encoder is a multi-layer LSTM with subsampling; a Pallas
    # linear + tanh stand-in keeps the (N, T, encoder_dim) interface.
    encoder_out = pallas_linear(x, p["enc_w"], p["enc_b"],
                                activation="tanh", out_dtype=jnp.bfloat16)

    # ---- decoder (stateless prediction net on stacked (sos_y, lang_id)) ----
    # TODO(synk): real decoder uses a Conv1d context window; embedding-sum + linear here.
    tok_emb = p["dec_emb"][sos_y_padded]
    lng_emb = p["lang_emb"][lang_padded]
    decoder_out = pallas_linear(tok_emb + lng_emb, p["dec_w"], p["dec_b"],
                                activation="relu", out_dtype=jnp.bfloat16)

    # ---- fused projections: encoder_out read once for 3 heads (plus the
    #      simple_am row-max side output so the normalizer never re-reads am);
    #      decoder_out read once for 2 heads; CTC log-softmax fused in-kernel ----
    (am, am_rowmax), (am_j, _), (nnet_output, _) = pallas_multi_proj(
        encoder_out,
        [dict(w=p["simple_am_w"], b=p["simple_am_b"], act="none",
              dtype=jnp.float32, rowmax=True),
         dict(w=p["join_enc_w"], b=p["join_enc_b"], act="none",
              dtype=jnp.bfloat16, rowmax=False),
         dict(w=p["ctc_w"], b=p["ctc_b"], act="log_softmax",
              dtype=jnp.float32, rowmax=False)])
    (lm, _), (lm_j, _) = pallas_multi_proj(
        decoder_out,
        [dict(w=p["simple_lm_w"], b=p["simple_lm_b"], act="none",
              dtype=jnp.float32, rowmax=False),
         dict(w=p["join_dec_w"], b=p["join_dec_b"], act="none",
              dtype=jnp.bfloat16, rowmax=False)])

    # ---- simple ("trivial joiner") rnnt loss ----
    # TODO(synk): k2.rnnt_loss_smoothed's lm_only/am_only smoothing terms omitted
    # (the forward defaults am_scale=lm_scale=0.0, which this reproduces).
    mam_lane = am_rowmax.reshape(B, T)[:, None, :]            # (B, 1, T), tiny
    normalizers = pallas_rnnt_normalizers(am, lm, mam_lane)   # Pallas/MXU
    simple_loss, px_grad, py_grad = rnnt_simple_loss_and_grads(
        am, lm, normalizers, y_padded, y_lens, x_lens, blank_id)

    # ---- pruning + pruned rnnt loss (fully fused joiner: only px/py in HBM) ----
    ranges = get_rnnt_prune_ranges(px_grad, py_grad, y_lens, x_lens, prune_range)
    S = y_padded.shape[1]
    sym_idx = jnp.clip(ranges, 0, S - 1)
    sym_tok = y_padded[jnp.arange(B)[:, None, None], sym_idx]         # (B,T,R) tiny
    px_vals, py_vals = pallas_pruned_joiner(
        am_j, lm_j, ranges[:, :, 0], sym_tok,
        p["join_out_w"], p["join_out_b"], blank_id)
    pruned_loss = rnnt_pruned_loss(px_vals, py_vals, ranges, S, y_lens, x_lens)

    # ---- CTC branch (log-probs already produced by the fused projection) ----
    ctc_loss = ctc_loss_per_utt(nnet_output, x_lens, y_padded, y_lens, blank_id)

    return simple_loss, pruned_loss, ctc_loss


# ----------------------------------------------------------------------------
if __name__ == "__main__":
    key = jax.random.PRNGKey(0)
    kp, kx = jax.random.split(key)

    B, T, C = 2, 16, 16
    encoder_dim, decoder_dim, joiner_dim, vocab = 32, 32, 32, 100
    blank_id = 0

    params = make_params(kp, C, encoder_dim, decoder_dim, joiner_dim, vocab)
    x = jax.random.normal(kx, (B, T, C), jnp.float32)
    x_lens = np.array([16, 12], np.int32)
    y_rows = [[5, 17, 3, 42, 9], [7, 7, 25]]          # ragged labels, ids in [1, vocab)
    lang_rows = [[2] * 6, [2] * 4]                    # ragged lang ids (len = |y_i| + 1)

    simple_loss, pruned_loss, ctc_loss = transducer_forward(
        params, x, x_lens, y_rows, lang_rows, blank_id=blank_id, prune_range=3)
    simple_loss, pruned_loss, ctc_loss = jax.block_until_ready(
        (simple_loss, pruned_loss, ctc_loss))
    assert bool(jnp.isfinite(simple_loss))
    assert bool(jnp.isfinite(pruned_loss))
    assert bool(jnp.all(jnp.isfinite(ctc_loss))) and ctc_loss.shape == (B,)
    print("KERNEL_OK")
</pallas_src>

<mosaic_0001>
module attributes {stable_mosaic.version = 11 : i64} {
  func.func @kernel(%arg0: i32, %arg1: memref<256x16xf32, #tpu.memory_space<vmem>>, %arg2: memref<16x32xbf16, #tpu.memory_space<vmem>>, %arg3: memref<1x32xf32, #tpu.memory_space<vmem>>, %arg4: memref<256x32xbf16, #tpu.memory_space<vmem>>) attributes {dimension_semantics = [#tpu.dimension_semantics<parallel>], iteration_bounds = array<i64: 1>, scalar_prefetch = 0 : i64, scratch_operands = 0 : i64, tpu.core_type = #tpu.core_type<tc>, window_params = [{transform_indices = @transform_0, window_bounds = array<i64: 256, 16>}, {pipeline_mode = #tpu.pipeline_mode<synchronous>, transform_indices = @transform_1, window_bounds = array<i64: 16, 32>}, {pipeline_mode = #tpu.pipeline_mode<synchronous>, transform_indices = @transform_2, window_bounds = array<i64: 1, 32>}, {transform_indices = @transform_3, window_bounds = array<i64: 256, 32>}]} {
    %c0 = arith.constant 0 : index
    %c0_0 = arith.constant 0 : index
    %0 = vector.load %arg1[%c0, %c0_0] : memref<256x16xf32, #tpu.memory_space<vmem>>, vector<256x16xf32>
    %1 = arith.truncf %0 : vector<256x16xf32> to vector<256x16xbf16>
    %c0_1 = arith.constant 0 : index
    %c0_2 = arith.constant 0 : index
    %2 = vector.load %arg2[%c0_1, %c0_2] : memref<16x32xbf16, #tpu.memory_space<vmem>>, vector<16x32xbf16>
    %cst = arith.constant dense<0.000000e+00> : vector<256x32xf32>
    %3 = tpu.matmul %1, %2, %cst {dimension_numbers = #tpu.dot_dimension_numbers<[1], [0], [0], [1], [0, 0, 1, 1], [], []>} : vector<256x16xbf16>, vector<16x32xbf16>, vector<256x32xf32> -> vector<256x32xf32>
    %c0_3 = arith.constant 0 : index
    %c0_4 = arith.constant 0 : index
    %4 = vector.load %arg3[%c0_3, %c0_4] : memref<1x32xf32, #tpu.memory_space<vmem>>, vector<1x32xf32>
    %5 = vector.broadcast %4 : vector<1x32xf32> to vector<256x32xf32>
    %6 = arith.addf %3, %5 : vector<256x32xf32>
    %7 = math.tanh %6 : vector<256x32xf32>
    %8 = arith.truncf %7 : vector<256x32xf32> to vector<256x32xbf16>
    %c0_5 = arith.constant 0 : index
    %c0_6 = arith.constant 0 : index
    %9 = vector.load %arg4[%c0_5, %c0_6] : memref<256x32xbf16, #tpu.memory_space<vmem>>, vector<256x32xbf16>
    tpu.vector_store %arg4[%c0_5, %c0_6], %8 {strides = array<i32>} : memref<256x32xbf16, #tpu.memory_space<vmem>>, vector<256x32xbf16>,
    return
  }
  func.func @transform_0(%arg0: i32) -> (i32, i32) {
    %c0_i32 = arith.constant 0 : i32
    %c0_i32_0 = arith.constant 0 : i32
    return %arg0, %c0_i32 : i32, i32
  }
  func.func @transform_1(%arg0: i32) -> (i32, i32) {
    %c0_i32 = arith.constant 0 : i32
    %c0_i32_0 = arith.constant 0 : i32
    %c0_i32_1 = arith.constant 0 : i32
    return %c0_i32, %c0_i32_0 : i32, i32
  }
  func.func @transform_2(%arg0: i32) -> (i32, i32) {
    %c0_i32 = arith.constant 0 : i32
    %c0_i32_0 = arith.constant 0 : i32
    %c0_i32_1 = arith.constant 0 : i32
    return %c0_i32, %c0_i32_0 : i32, i32
  }
  func.func @transform_3(%arg0: i32) -> (i32, i32) {
    %c0_i32 = arith.constant 0 : i32
    %c0_i32_0 = arith.constant 0 : i32
    return %arg0, %c0_i32 : i32, i32
  }
}

</mosaic_0001>

<bundles_post_ra>
// kernel: tpu_custom_call.1
= control target key start
LH: loop header
LB: loop body
LE: loop exit
PB: predicated region body
PF: predicated region fallthrough
CT: control target
= control target key end

     0   :  { %vm78_vm0 = vcmask 130048   ;;  %vm448_vm1 = vcmask 257024   ;;  %s985_s1 = inlined_call_operand.vmem [shape: bf16[16,32], index: 1, kind: input, shape index: {}]   ;;  %s986_s0 = inlined_call_operand.vmem [shape: f32[256,16], index: 0, kind: input, shape index: {}]   ;;  %s987_s2 = inlined_call_operand.vmem [shape: f32[1,32], index: 2, kind: input, shape index: {}]   ;;  %s988_s3 = inlined_call_operand.vmem [shape: bf16[256,32], index: 3, kind: output, shape index: {}]  }
   0x1   :  { %v620_v0 = vld [vmem:[%s985_s1] sm:$0xff]   ;;  %v16_v2 = vld [vmem:[%s986_s0 + $0x8] sm:$0xff]  ;;  %v17_v6 = vld [vmem:[%s986_s0 + $0x10] sm:$0xff] }
   0x2   :  { %v15_v1 = vld [vmem:[%s986_s0] sm:$0xff]  ;;  %584 = vmatprep.subr.bf16.mxu0 %v620_v0  ;;  %618 = vmatprep.subr.bf16.mxu1 %v620_v0  ;;  %v32_v5 = vld [vmem:[%s986_s0 + $0x88] sm:$0xff]  ;;  %v18_v7 = vld [vmem:[%s986_s0 + $0x18] sm:$0xff] }
   0x3   :  { %v31_v3 = vld [vmem:[%s986_s0 + $0x80] sm:$0xff]  ;;  %v47_v4 = vpack.c.bf16 %v16_v2, %v15_v1  ;;  %585 = vmatpush3.bf16.msra.mxu0 %v620_v0  ;;  %619 = vmatpush3.bf16.msra.mxu1 %v620_v0  ;;  %v48_v9 = vpack.c.bf16 %v18_v7, %v17_v6  ;;  %v33_v10 = vld [vmem:[%s986_s0 + $0x90] sm:$0xff]  ;;  %v34_v11 = vld [vmem:[%s986_s0 + $0x98] sm:$0xff] }
   0x4   :  { %v55_v8 = vpack.c.bf16 %v32_v5, %v31_v3  ;;  %v19_v12 = vld [vmem:[%s986_s0 + $0x20] sm:$0xff]  ;;  %v56_v13 = vpack.c.bf16 %v34_v11, %v33_v10  ;;  %v20_v14 = vld [vmem:[%s986_s0 + $0x28] sm:$0xff]  ;;  %v21_v19 = vld [vmem:[%s986_s0 + $0x30] sm:$0xff] }
   0x5   :  { %586 = vmatprep.mubr.msk.bf16.mxu0 %vm78_vm0, %v47_v4  ;;  %v35_v15 = vld [vmem:[%s986_s0 + $0xa0] sm:$0xff]  ;;  %v36_v16 = vld [vmem:[%s986_s0 + $0xa8] sm:$0xff]  ;;  %v49_v17 = vpack.c.bf16 %v20_v14, %v19_v12  ;;  %v22_v20 = vld [vmem:[%s986_s0 + $0x38] sm:$0xff] }
   0x6   :  { %602 = vmatprep.mubr.msk.bf16.mxu1 %vm78_vm0, %v55_v8  ;;  %v57_v18 = vpack.c.bf16 %v36_v16, %v35_v15  ;;  %587 = vmatmul.mubr.msk.bf16.vlgmr.msra.gmra.mrb[0].mxu0 %vm78_vm0, %v48_v9  ;;  %v37_v21 = vld [vmem:[%s986_s0 + $0xb0] sm:$0xff]  ;;  %v38_v22 = vld [vmem:[%s986_s0 + $0xb8] sm:$0xff]  ;;  %v23_v23 = vld [vmem:[%s986_s0 + $0x40] sm:$0xff]  ;;  %v50_v27 = vpack.c.bf16 %v22_v20, %v21_v19 }
   0x7   :  { %603 = vmatmul.mubr.msk.bf16.vlgmr.msra.gmra.mrb[0].mxu1 %vm78_vm0, %v56_v13  ;;  %590 = vmatprep.mubr.msk.bf16.mxu0 %vm78_vm0, %v49_v17  ;;  %v24_v24 = vld [vmem:[%s986_s0 + $0x48] sm:$0xff]  ;;  %v39_v25 = vld [vmem:[%s986_s0 + $0xc0] sm:$0xff]  ;;  %v58_v28 = vpack.c.bf16 %v38_v22, %v37_v21  ;;  %v25_v31 = vld [vmem:[%s986_s0 + $0x50] sm:$0xff] }
   0x8   :  { %606 = vmatprep.mubr.msk.bf16.mxu1 %vm78_vm0, %v57_v18  ;;  %v40_v26 = vld [vmem:[%s986_s0 + $0xc8] sm:$0xff]  ;;  %v51_v29 = vpack.c.bf16 %v24_v24, %v23_v23  ;;  %v26_v32 = vld [vmem:[%s986_s0 + $0x58] sm:$0xff]  ;;  %v41_v33 = vld [vmem:[%s986_s0 + $0xd0] sm:$0xff] }
   0x9   :  { %v59_v30 = vpack.c.bf16 %v40_v26, %v39_v25  ;;  %v42_v34 = vld [vmem:[%s986_s0 + $0xd8] sm:$0xff]  ;;  %v27_v35 = vld [vmem:[%s986_s0 + $0x60] sm:$0xff]  ;;  %v28_v36 = vld [vmem:[%s986_s0 + $0x68] sm:$0xff]  ;;  %v52_v39 = vpack.c.bf16 %v26_v32, %v25_v31 }
   0xa   :  { %v43_v37 = vld [vmem:[%s986_s0 + $0xe0] sm:$0xff]  ;;  %v44_v38 = vld [vmem:[%s986_s0 + $0xe8] sm:$0xff]  ;;  %v60_v40 = vpack.c.bf16 %v42_v34, %v41_v33  ;;  %v53_v41 = vpack.c.bf16 %v28_v36, %v27_v35  ;;  %v29_v43 = vld [vmem:[%s986_s0 + $0x70] sm:$0xff] }
   0xb   :  { %v61_v42 = vpack.c.bf16 %v44_v38, %v43_v37  ;;  %v30_v44 = vld [vmem:[%s986_s0 + $0x78] sm:$0xff]  ;;  %v45_v45 = vld [vmem:[%s986_s0 + $0xf0] sm:$0xff]  ;;  %v823_v49 = vld [vmem:[%s987_s2] ss:$0 sm:$0xff] }
   0xc   :  { %v46_v46 = vld [vmem:[%s986_s0 + $0xf8] sm:$0xff]  ;;  %v54_v47 = vpack.c.bf16 %v30_v44, %v29_v43 }
   0xd   :  { %v62_v48 = vpack.c.bf16 %v46_v46, %v45_v45 }
   0xe   :  { %591 = vmatmul.mubr.msk.bf16.gmra.mrb[4].mxu0 %vm78_vm0, %v50_v27 }
   0xf   :  { %607 = vmatmul.mubr.msk.bf16.gmra.mrb[4].mxu1 %vm78_vm0, %v58_v28  ;;  %594 = vmatprep.mubr.msk.bf16.mxu0 %vm78_vm0, %v51_v29 }
  0x10   :  { %610 = vmatprep.mubr.msk.bf16.mxu1 %vm78_vm0, %v59_v30 }
  0x16   :  { %595 = vmatmul.mubr.msk.bf16.gmra.mrb[8].mxu0 %vm78_vm0, %v52_v39 }
  0x17   :  { %611 = vmatmul.mubr.msk.bf16.gmra.mrb[8].mxu1 %vm78_vm0, %v60_v40  ;;  %598 = vmatprep.mubr.msk.bf16.mxu0 %vm78_vm0, %v53_v41 }
  0x18   :  { %614 = vmatprep.mubr.msk.bf16.mxu1 %vm78_vm0, %v61_v42 }
  0x1e   :  { %599 = vmatmul.mubr.msk.bf16.gmra.mrb[12].mxu0 %vm78_vm0, %v54_v47 }
  0x1f   :  { %615 = vmatmul.mubr.msk.bf16.gmra.mrb[12].mxu1 %vm78_vm0, %v62_v48 }
  0xd9   :  { %v588_v50 = vpop.f32.mrb[0].mxu0 }
  0xda   :  { %v604_v51 = vpop.f32.mrb[0].mxu1  ;;  %v170_v52 = vadd.f32 %v588_v50, %v823_v49  ;;  %v161_v54 = vpop.f32.mrb[1].mxu0 }
  0xdb   :  { %v234_v53 = vadd.f32 %v604_v51, %v823_v49  ;;  %v225_v55 = vpop.f32.mrb[1].mxu1  ;;  %v162_v56 = vadd.f32 %v823_v49, %v161_v54  ;;  %v589_v58 = vpop.f32.mrb[2].mxu0 }
  0xdc   :  { %v226_v57 = vadd.f32 %v823_v49, %v225_v55  ;;  %v605_v59 = vpop.f32.mrb[2].mxu1  ;;  %621 = vtanh.f32 %v170_v52  ;;  %v173_v60 = vadd.f32 %v589_v58, %v823_v49  ;;  %v164_v61 = vpop.f32.mrb[3].mxu0 }
  0xdd   :  { %v228_v62 = vpop.f32.mrb[3].mxu1  ;;  %623 = vtanh.f32 %v234_v53  ;;  %v237_v63 = vadd.f32 %v605_v59, %v823_v49  ;;  %v165_v0 = vadd.f32 %v823_v49, %v164_v61 }
  0xde   :  { %625 = vtanh.f32 %v162_v56  ;;  %v229_v1 = vadd.f32 %v823_v49, %v228_v62 }
  0xdf   :  { %627 = vtanh.f32 %v226_v57 }
  0xe0   :  { %629 = vtanh.f32 %v173_v60 }
  0xe1   :  { %631 = vtanh.f32 %v237_v63  ;;  %v592_v2 = vpop.f32.mrb[4].mxu0 }
  0xe2   :  { %v608_v3 = vpop.f32.mrb[4].mxu1  ;;  %633 = vtanh.f32 %v165_v0  ;;  %v186_v4 = vadd.f32 %v592_v2, %v823_v49  ;;  %v177_v6 = vpop.f32.mrb[5].mxu0 }
  0xe3   :  { %v250_v5 = vadd.f32 %v608_v3, %v823_v49  ;;  %v241_v7 = vpop.f32.mrb[5].mxu1  ;;  %635 = vtanh.f32 %v229_v1  ;;  %v178_v8 = vadd.f32 %v823_v49, %v177_v6  ;;  %v593_v10 = vpop.f32.mrb[6].mxu0 }
  0xe4   :  { %v242_v9 = vadd.f32 %v823_v49, %v241_v7  ;;  %v609_v11 = vpop.f32.mrb[6].mxu1  ;;  %637 = vtanh.f32 %v186_v4  ;;  %v189_v12 = vadd.f32 %v593_v10, %v823_v49  ;;  %v180_v13 = vpop.f32.mrb[7].mxu0 }
  0xe5   :  { %v244_v14 = vpop.f32.mrb[7].mxu1  ;;  %639 = vtanh.f32 %v250_v5  ;;  %v253_v15 = vadd.f32 %v609_v11, %v823_v49  ;;  %v181_v17 = vadd.f32 %v823_v49, %v180_v13 }
  0xe6   :  { %v622_v16 = vpop.eup %621  ;;  %641 = vtanh.f32 %v178_v8  ;;  %v245_v20 = vadd.f32 %v823_v49, %v244_v14 }
  0xe7   :  { %v624_v18 = vpop.eup %623  ;;  %v537_v19 = vpack.c.bf16 %v622_v16, %v622_v16  ;;  %643 = vtanh.f32 %v242_v9 }
  0xe8   :  { %v626_v21 = vpop.eup %625  ;;  %v553_v22 = vpack.c.bf16 %v624_v18, %v624_v18  ;;  %645 = vtanh.f32 %v189_v12 }
  0xe9   :  { %v628_v23 = vpop.eup %627  ;;  %451 = vst.msk [vmem:[%s988_s3 + $0x8] sm:$0xf] %vm448_vm1, %v537_v19  ;;  %v535_v24 = vpack.c.bf16 %v626_v21, %v626_v21  ;;  %647 = vtanh.f32 %v253_v15  ;;  %v596_v25 = vpop.f32.mrb[8].mxu0 }
  0xea   :  { %v612_v26 = vpop.f32.mrb[8].mxu1  ;;  %v630_v27 = vpop.eup %629  ;;  %467 = vst.msk [vmem:[%s988_s3 + $0x48] sm:$0xf] %vm448_vm1, %v553_v22  ;;  %v551_v28 = vpack.c.bf16 %v628_v23, %v628_v23  ;;  %649 = vtanh.f32 %v181_v17  ;;  %v202_v29 = vadd.f32 %v596_v25, %v823_v49 }
  0xeb   :  { %v266_v30 = vadd.f32 %v612_v26, %v823_v49  ;;  %v193_v31 = vpop.f32.mrb[9].mxu0  ;;  %v257_v32 = vpop.f32.mrb[9].mxu1  ;;  %449 = vst.msk [vmem:[%s988_s3] sm:$0xf] %vm448_vm1, %v535_v24  ;;  %v538_v34 = vpack.c.bf16 %v630_v27, %v630_v27  ;;  %651 = vtanh.f32 %v245_v20 }
  0xec   :  { %v632_v33 = vpop.eup %631  ;;  %v194_v35 = vadd.f32 %v823_v49, %v193_v31  ;;  %v258_v36 = vadd.f32 %v823_v49, %v257_v32  ;;  %v597_v37 = vpop.f32.mrb[10].mxu0  ;;  %465 = vst.msk [vmem:[%s988_s3 + $0x40] sm:$0xf] %vm448_vm1, %v551_v28  ;;  %653 = vtanh.f32 %v202_v29 }
  0xed   :  { %v613_v38 = vpop.f32.mrb[10].mxu1  ;;  %v634_v39 = vpop.eup %633  ;;  %v554_v40 = vpack.c.bf16 %v632_v33, %v632_v33  ;;  %v205_v41 = vadd.f32 %v597_v37, %v823_v49  ;;  %452 = vst.msk [vmem:[%s988_s3 + $0xc] sm:$0xf] %vm448_vm1, %v538_v34  ;;  %655 = vtanh.f32 %v266_v30 }
  0xee   :  { %v196_v42 = vpop.f32.mrb[11].mxu0  ;;  %v260_v43 = vpop.f32.mrb[11].mxu1  ;;  %v536_v45 = vpack.c.bf16 %v634_v39, %v634_v39  ;;  %v269_v46 = vadd.f32 %v613_v38, %v823_v49  ;;  %657 = vtanh.f32 %v194_v35 }
  0xef   :  { %v636_v44 = vpop.eup %635  ;;  %468 = vst.msk [vmem:[%s988_s3 + $0x4c] sm:$0xf] %vm448_vm1, %v554_v40  ;;  %v197_v50 = vadd.f32 %v823_v49, %v196_v42  ;;  %659 = vtanh.f32 %v258_v36  ;;  %v261_v53 = vadd.f32 %v823_v49, %v260_v43 }
  0xf0   :  { %v638_v47 = vpop.eup %637  ;;  %v552_v48 = vpack.c.bf16 %v636_v44, %v636_v44  ;;  %450 = vst.msk [vmem:[%s988_s3 + $0x4] sm:$0xf] %vm448_vm1, %v536_v45  ;;  %661 = vtanh.f32 %v205_v41 }
  0xf1   :  { %v640_v51 = vpop.eup %639  ;;  %v541_v52 = vpack.c.bf16 %v638_v47, %v638_v47  ;;  %663 = vtanh.f32 %v269_v46  ;;  %v600_v58 = vpop.f32.mrb[12].mxu0 }
  0xf2   :  { %v642_v54 = vpop.eup %641  ;;  %466 = vst.msk [vmem:[%s988_s3 + $0x44] sm:$0xf] %vm448_vm1, %v552_v48  ;;  %v557_v55 = vpack.c.bf16 %v640_v51, %v640_v51  ;;  %v616_v59 = vpop.f32.mrb[12].mxu1  ;;  %665 = vtanh.f32 %v197_v50  ;;  %v218_v62 = vadd.f32 %v600_v58, %v823_v49 }
  0xf3   :  { %v644_v56 = vpop.eup %643  ;;  %455 = vst.msk [vmem:[%s988_s3 + $0x18] sm:$0xf] %vm448_vm1, %v541_v52  ;;  %v539_v57 = vpack.c.bf16 %v642_v54, %v642_v54  ;;  %v282_v63 = vadd.f32 %v616_v59, %v823_v49  ;;  %v209_v0 = vpop.f32.mrb[13].mxu0  ;;  %667 = vtanh.f32 %v261_v53 }
  0xf4   :  { %v646_v60 = vpop.eup %645  ;;  %471 = vst.msk [vmem:[%s988_s3 + $0x58] sm:$0xf] %vm448_vm1, %v557_v55  ;;  %v555_v61 = vpack.c.bf16 %v644_v56, %v644_v56  ;;  %v273_v1 = vpop.f32.mrb[13].mxu1  ;;  %v210_v4 = vadd.f32 %v823_v49, %v209_v0  ;;  %669 = vtanh.f32 %v218_v62 }
  0xf5   :  { %v648_v2 = vpop.eup %647  ;;  %453 = vst.msk [vmem:[%s988_s3 + $0x10] sm:$0xf] %vm448_vm1, %v539_v57  ;;  %v542_v3 = vpack.c.bf16 %v646_v60, %v646_v60  ;;  %v274_v5 = vadd.f32 %v823_v49, %v273_v1  ;;  %v601_v6 = vpop.f32.mrb[14].mxu0  ;;  %671 = vtanh.f32 %v282_v63 }
  0xf6   :  { %v617_v7 = vpop.f32.mrb[14].mxu1  ;;  %v650_v8 = vpop.eup %649  ;;  %469 = vst.msk [vmem:[%s988_s3 + $0x50] sm:$0xf] %vm448_vm1, %v555_v61  ;;  %v558_v9 = vpack.c.bf16 %v648_v2, %v648_v2  ;;  %v221_v10 = vadd.f32 %v601_v6, %v823_v49  ;;  %673 = vtanh.f32 %v210_v4 }
  0xf7   :  { %v212_v11 = vpop.f32.mrb[15].mxu0  ;;  %v276_v12 = vpop.f32.mrb[15].mxu1  ;;  %456 = vst.msk [vmem:[%s988_s3 + $0x1c] sm:$0xf] %vm448_vm1, %v542_v3  ;;  %v540_v14 = vpack.c.bf16 %v650_v8, %v650_v8  ;;  %v285_v15 = vadd.f32 %v617_v7, %v823_v49  ;;  %675 = vtanh.f32 %v274_v5 }
  0xf8   :  { %v652_v13 = vpop.eup %651  ;;  %472 = vst.msk [vmem:[%s988_s3 + $0x5c] sm:$0xf] %vm448_vm1, %v558_v9  ;;  %v213_v18 = vadd.f32 %v823_v49, %v212_v11  ;;  %v277_v21 = vadd.f32 %v823_v49, %v276_v12  ;;  %677 = vtanh.f32 %v221_v10 }
  0xf9   :  { %v654_v16 = vpop.eup %653  ;;  %v556_v17 = vpack.c.bf16 %v652_v13, %v652_v13  ;;  %454 = vst.msk [vmem:[%s988_s3 + $0x14] sm:$0xf] %vm448_vm1, %v540_v14  ;;  %679 = vtanh.f32 %v285_v15 }
  0xfa   :  { %v656_v19 = vpop.eup %655  ;;  %v545_v20 = vpack.c.bf16 %v654_v16, %v654_v16  ;;  %681 = vtanh.f32 %v213_v18 }
  0xfb   :  { %v658_v22 = vpop.eup %657  ;;  %470 = vst.msk [vmem:[%s988_s3 + $0x54] sm:$0xf] %vm448_vm1, %v556_v17  ;;  %v561_v23 = vpack.c.bf16 %v656_v19, %v656_v19  ;;  %683 = vtanh.f32 %v277_v21 }
  0xfc   :  { %v660_v24 = vpop.eup %659  ;;  %459 = vst.msk [vmem:[%s988_s3 + $0x28] sm:$0xf] %vm448_vm1, %v545_v20  ;;  %v543_v25 = vpack.c.bf16 %v658_v22, %v658_v22 }
  0xfd   :  { %v662_v26 = vpop.eup %661  ;;  %475 = vst.msk [vmem:[%s988_s3 + $0x68] sm:$0xf] %vm448_vm1, %v561_v23  ;;  %v559_v49 = vpack.c.bf16 %v660_v24, %v660_v24 }
  0xfe   :  { %v664_v27 = vpop.eup %663  ;;  %457 = vst.msk [vmem:[%s988_s3 + $0x20] sm:$0xf] %vm448_vm1, %v543_v25  ;;  %v546_v28 = vpack.c.bf16 %v662_v26, %v662_v26 }
  0xff   :  { %v666_v29 = vpop.eup %665  ;;  %473 = vst.msk [vmem:[%s988_s3 + $0x60] sm:$0xf] %vm448_vm1, %v559_v49  ;;  %v562_v30 = vpack.c.bf16 %v664_v27, %v664_v27 }
 0x100   :  { %v668_v31 = vpop.eup %667  ;;  %460 = vst.msk [vmem:[%s988_s3 + $0x2c] sm:$0xf] %vm448_vm1, %v546_v28  ;;  %v544_v32 = vpack.c.bf16 %v666_v29, %v666_v29 }
 0x101   :  { %v670_v33 = vpop.eup %669  ;;  %476 = vst.msk [vmem:[%s988_s3 + $0x6c] sm:$0xf] %vm448_vm1, %v562_v30  ;;  %v560_v34 = vpack.c.bf16 %v668_v31, %v668_v31 }
 0x102   :  { %v672_v35 = vpop.eup %671  ;;  %458 = vst.msk [vmem:[%s988_s3 + $0x24] sm:$0xf] %vm448_vm1, %v544_v32  ;;  %v549_v36 = vpack.c.bf16 %v670_v33, %v670_v33 }
 0x103   :  { %v674_v37 = vpop.eup %673  ;;  %474 = vst.msk [vmem:[%s988_s3 + $0x64] sm:$0xf] %vm448_vm1, %v560_v34  ;;  %v565_v38 = vpack.c.bf16 %v672_v35, %v672_v35 }
 0x104   :  { %v676_v39 = vpop.eup %675  ;;  %463 = vst.msk [vmem:[%s988_s3 + $0x38] sm:$0xf] %vm448_vm1, %v549_v36  ;;  %v547_v40 = vpack.c.bf16 %v674_v37, %v674_v37 }
 0x105   :  { %v678_v41 = vpop.eup %677  ;;  %479 = vst.msk [vmem:[%s988_s3 + $0x78] sm:$0xf] %vm448_vm1, %v565_v38  ;;  %v563_v42 = vpack.c.bf16 %v676_v39, %v676_v39 }
 0x106   :  { %v680_v43 = vpop.eup %679  ;;  %461 = vst.msk [vmem:[%s988_s3 + $0x30] sm:$0xf] %vm448_vm1, %v547_v40  ;;  %v550_v44 = vpack.c.bf16 %v678_v41, %v678_v41 }
 0x107   :  { %v682_v45 = vpop.eup %681  ;;  %477 = vst.msk [vmem:[%s988_s3 + $0x70] sm:$0xf] %vm448_vm1, %v563_v42  ;;  %v566_v46 = vpack.c.bf16 %v680_v43, %v680_v43 }
 0x108   :  { %v684_v47 = vpop.eup %683  ;;  %464 = vst.msk [vmem:[%s988_s3 + $0x3c] sm:$0xf] %vm448_vm1, %v550_v44  ;;  %v548_v48 = vpack.c.bf16 %v682_v45, %v682_v45 }
 0x109   :  { %480 = vst.msk [vmem:[%s988_s3 + $0x7c] sm:$0xf] %vm448_vm1, %v566_v46  ;;  %v564_v50 = vpack.c.bf16 %v684_v47, %v684_v47 }
 0x10a   :  { %462 = vst.msk [vmem:[%s988_s3 + $0x34] sm:$0xf] %vm448_vm1, %v548_v48 }
 0x10b   :  { %478 = vst.msk [vmem:[%s988_s3 + $0x74] sm:$0xf] %vm448_vm1, %v564_v50 }

</bundles_post_ra>
